<compile_context>
chip_gen: v5e
topology: v5e:2x2
jax: 0.10.0
libtpu: 0.0.40
codegen_flags: <defaults>
</compile_context>

<pallas_src>
import functools

import jax
import jax.numpy as jnp
from jax.experimental import pallas as pl
from jax.experimental.pallas import tpu as pltpu


def _round_up(n: int, m: int) -> int:
    return ((n + m - 1) // m) * m


def _net_kernel(x_ref, w1_ref, b1_ref, w2_ref, b2_ref, o_ref):
    # x_ref: (TB, in_p) bf16, resident weights bf16, biases f32.
    x = x_ref[...]
    h = jnp.dot(x, w1_ref[...], preferred_element_type=jnp.float32)   # MXU, f32 acc
    h = jnp.maximum(h + b1_ref[...], 0.0)                             # bias + ReLU (VPU, f32)
    y = jnp.dot(h.astype(w2_ref.dtype), w2_ref[...],
                preferred_element_type=jnp.float32)                   # MXU, f32 acc
    y = y + b2_ref[...]
    o_ref[...] = jnp.tanh(y).astype(o_ref.dtype)                      # tanh on EUP


@functools.partial(jax.jit, static_argnames=("tb",))
def net_forward(x, w1, b1, w2, b2, *, tb=256):
    """Forward pass of Net. x: (B, input_size) f32 -> (B, output_size) f32.

    w1: (input_size, hidden_size), b1: (hidden_size,)
    w2: (hidden_size, output_size), b2: (output_size,)
    (weights stored transposed vs. PyTorch so the kernel computes x @ W + b).
    """
    B, in_size = x.shape
    hid = w1.shape[1]
    out = w2.shape[1]

    # Hardware-aligned (lane/sublane) padded sizes.
    in_p = _round_up(in_size, 128)
    hid_p = _round_up(hid, 128)
    out_p = _round_up(out, 128)
    # Batch tile: multiple of 16 (bf16 sublane packing), never larger than needed.
    TB = min(_round_up(tb, 16), _round_up(B, 16))
    B_p = _round_up(B, TB)

    # Zero-padding keeps the math identical: padded x cols hit zero w1 rows,
    # padded hidden units get zero weight + zero bias -> relu(0)=0 and feed zero
    # w2 rows, padded output lanes get zero weight + zero bias -> tanh(0)=0.
    xp = jnp.zeros((B_p, in_p), jnp.bfloat16).at[:B, :in_size].set(
        x.astype(jnp.bfloat16))
    w1p = jnp.zeros((in_p, hid_p), jnp.bfloat16).at[:in_size, :hid].set(
        w1.astype(jnp.bfloat16))
    b1p = jnp.zeros((1, hid_p), jnp.float32).at[0, :hid].set(
        b1.astype(jnp.float32))
    w2p = jnp.zeros((hid_p, out_p), jnp.bfloat16).at[:hid, :out].set(
        w2.astype(jnp.bfloat16))
    b2p = jnp.zeros((1, out_p), jnp.float32).at[0, :out].set(
        b2.astype(jnp.float32))

    # VMEM budget: double-buffered x/out tiles + resident weights/biases +
    # f32 intermediates, with 2x headroom, clamped to a safe range for v7x.
    vmem_est = (
        2 * TB * in_p * 2          # x tiles (bf16, double-buffered)
        + 2 * TB * out_p * 4       # out tiles (f32, double-buffered)
        + (in_p * hid_p + hid_p * out_p) * 2   # resident bf16 weights
        + (hid_p + out_p) * 4                  # resident f32 biases
        + TB * hid_p * 4 + TB * out_p * 4      # f32 intermediates
    )
    vmem_limit = int(min(max(2 * vmem_est, 16 * 1024 * 1024), 48 * 1024 * 1024))

    grid = (B_p // TB,)
    out_padded = pl.pallas_call(
        _net_kernel,
        out_shape=jax.ShapeDtypeStruct((B_p, out_p), jnp.float32),
        grid=grid,
        in_specs=[
            pl.BlockSpec((TB, in_p), lambda i: (i, 0)),      # x: tiled over batch
            pl.BlockSpec((in_p, hid_p), lambda i: (0, 0)),   # w1: resident
            pl.BlockSpec((1, hid_p), lambda i: (0, 0)),      # b1: resident
            pl.BlockSpec((hid_p, out_p), lambda i: (0, 0)),  # w2: resident
            pl.BlockSpec((1, out_p), lambda i: (0, 0)),      # b2: resident
        ],
        out_specs=pl.BlockSpec((TB, out_p), lambda i: (i, 0)),
        compiler_params=pltpu.CompilerParams(
            dimension_semantics=("parallel",),
            vmem_limit_bytes=vmem_limit,
        ),
    )(xp, w1p, b1p, w2p, b2p)

    return out_padded[:B, :out]


def init_params(key, input_size, hidden_size, output_size):
    """PyTorch-style nn.Linear init: uniform(-1/sqrt(fan_in), 1/sqrt(fan_in))."""
    k1, k2, k3, k4 = jax.random.split(key, 4)
    bound1 = 1.0 / jnp.sqrt(input_size)
    bound2 = 1.0 / jnp.sqrt(hidden_size)
    # Stored transposed vs PyTorch: (in, out) so the kernel does x @ W.
    w1 = jax.random.uniform(k1, (input_size, hidden_size), jnp.float32,
                            minval=-bound1, maxval=bound1)
    b1 = jax.random.uniform(k2, (hidden_size,), jnp.float32,
                            minval=-bound1, maxval=bound1)
    w2 = jax.random.uniform(k3, (hidden_size, output_size), jnp.float32,
                            minval=-bound2, maxval=bound2)
    b2 = jax.random.uniform(k4, (output_size,), jnp.float32,
                            minval=-bound2, maxval=bound2)
    return w1, b1, w2, b2


if __name__ == "__main__":
    # Small shapes consistent with the module's forward (dense MLP on vectors).
    batch = 2
    input_size = 8
    hidden_size = 32
    output_size = 4

    key = jax.random.PRNGKey(0)
    kx, kp = jax.random.split(key)
    x = jax.random.normal(kx, (batch, input_size), jnp.float32)
    w1, b1, w2, b2 = init_params(kp, input_size, hidden_size, output_size)

    out = net_forward(x, w1, b1, w2, b2)
    jax.block_until_ready(out)
    assert out.shape == (batch, output_size)

    # Reference that mirrors the kernel's bf16 operand rounding (f32 accumulate).
    xb = x.astype(jnp.bfloat16).astype(jnp.float32)
    w1b = w1.astype(jnp.bfloat16).astype(jnp.float32)
    w2b = w2.astype(jnp.bfloat16).astype(jnp.float32)
    h_ref = jnp.maximum(xb @ w1b + b1[None, :], 0.0)
    h_ref = h_ref.astype(jnp.bfloat16).astype(jnp.float32)
    ref_bf16 = jnp.tanh(h_ref @ w2b + b2[None, :])
    assert jnp.allclose(out, ref_bf16, atol=2e-3, rtol=2e-3)

    # Loose check against the full-f32 PyTorch-equivalent forward.
    ref_f32 = jnp.tanh(jnp.maximum(x @ w1 + b1[None, :], 0.0) @ w2 + b2[None, :])
    assert jnp.allclose(out, ref_f32, atol=3e-2, rtol=3e-2)

    print("KERNEL_OK")
</pallas_src>

<mosaic_0001>
module attributes {stable_mosaic.version = 11 : i64} {
  func.func @_net_kernel(%arg0: i32, %arg1: memref<16x128xbf16, #tpu.memory_space<vmem>>, %arg2: memref<128x128xbf16, #tpu.memory_space<vmem>>, %arg3: memref<1x128xf32, #tpu.memory_space<vmem>>, %arg4: memref<128x128xbf16, #tpu.memory_space<vmem>>, %arg5: memref<1x128xf32, #tpu.memory_space<vmem>>, %arg6: memref<16x128xf32, #tpu.memory_space<vmem>>) attributes {dimension_semantics = [#tpu.dimension_semantics<parallel>], iteration_bounds = array<i64: 1>, scalar_prefetch = 0 : i64, scratch_operands = 0 : i64, tpu.core_type = #tpu.core_type<tc>, window_params = [{transform_indices = @transform_0, window_bounds = array<i64: 16, 128>}, {pipeline_mode = #tpu.pipeline_mode<synchronous>, transform_indices = @transform_1, window_bounds = array<i64: 128, 128>}, {pipeline_mode = #tpu.pipeline_mode<synchronous>, transform_indices = @transform_2, window_bounds = array<i64: 1, 128>}, {pipeline_mode = #tpu.pipeline_mode<synchronous>, transform_indices = @transform_3, window_bounds = array<i64: 128, 128>}, {pipeline_mode = #tpu.pipeline_mode<synchronous>, transform_indices = @transform_4, window_bounds = array<i64: 1, 128>}, {transform_indices = @transform_5, window_bounds = array<i64: 16, 128>}]} {
    %c0 = arith.constant 0 : index
    %c0_0 = arith.constant 0 : index
    %0 = vector.load %arg1[%c0, %c0_0] : memref<16x128xbf16, #tpu.memory_space<vmem>>, vector<16x128xbf16>
    %c0_1 = arith.constant 0 : index
    %c0_2 = arith.constant 0 : index
    %1 = vector.load %arg2[%c0_1, %c0_2] : memref<128x128xbf16, #tpu.memory_space<vmem>>, vector<128x128xbf16>
    %cst = arith.constant dense<0.000000e+00> : vector<16x128xf32>
    %2 = tpu.matmul %0, %1, %cst {dimension_numbers = #tpu.dot_dimension_numbers<[1], [0], [0], [1], [0, 0, 1, 1], [], []>} : vector<16x128xbf16>, vector<128x128xbf16>, vector<16x128xf32> -> vector<16x128xf32>
    %c0_3 = arith.constant 0 : index
    %c0_4 = arith.constant 0 : index
    %3 = vector.load %arg3[%c0_3, %c0_4] : memref<1x128xf32, #tpu.memory_space<vmem>>, vector<1x128xf32>
    %4 = vector.broadcast %3 : vector<1x128xf32> to vector<16x128xf32>
    %5 = arith.addf %2, %4 : vector<16x128xf32>
    %cst_5 = arith.constant 0.000000e+00 : f32
    %6 = vector.broadcast %cst_5 : f32 to vector<16x128xf32>
    %7 = arith.maximumf %5, %6 : vector<16x128xf32>
    %8 = arith.truncf %7 : vector<16x128xf32> to vector<16x128xbf16>
    %c0_6 = arith.constant 0 : index
    %c0_7 = arith.constant 0 : index
    %9 = vector.load %arg4[%c0_6, %c0_7] : memref<128x128xbf16, #tpu.memory_space<vmem>>, vector<128x128xbf16>
    %cst_8 = arith.constant dense<0.000000e+00> : vector<16x128xf32>
    %10 = tpu.matmul %8, %9, %cst_8 {dimension_numbers = #tpu.dot_dimension_numbers<[1], [0], [0], [1], [0, 0, 1, 1], [], []>} : vector<16x128xbf16>, vector<128x128xbf16>, vector<16x128xf32> -> vector<16x128xf32>
    %c0_9 = arith.constant 0 : index
    %c0_10 = arith.constant 0 : index
    %11 = vector.load %arg5[%c0_9, %c0_10] : memref<1x128xf32, #tpu.memory_space<vmem>>, vector<1x128xf32>
    %12 = vector.broadcast %11 : vector<1x128xf32> to vector<16x128xf32>
    %13 = arith.addf %10, %12 : vector<16x128xf32>
    %14 = math.tanh %13 : vector<16x128xf32>
    %c0_11 = arith.constant 0 : index
    %c0_12 = arith.constant 0 : index
    %15 = vector.load %arg6[%c0_11, %c0_12] : memref<16x128xf32, #tpu.memory_space<vmem>>, vector<16x128xf32>
    tpu.vector_store %arg6[%c0_11, %c0_12], %14 {strides = array<i32>} : memref<16x128xf32, #tpu.memory_space<vmem>>, vector<16x128xf32>,
    return
  }
  func.func @transform_0(%arg0: i32) -> (i32, i32) {
    %c0_i32 = arith.constant 0 : i32
    %c0_i32_0 = arith.constant 0 : i32
    return %arg0, %c0_i32 : i32, i32
  }
  func.func @transform_1(%arg0: i32) -> (i32, i32) {
    %c0_i32 = arith.constant 0 : i32
    %c0_i32_0 = arith.constant 0 : i32
    %c0_i32_1 = arith.constant 0 : i32
    return %c0_i32, %c0_i32_0 : i32, i32
  }
  func.func @transform_2(%arg0: i32) -> (i32, i32) {
    %c0_i32 = arith.constant 0 : i32
    %c0_i32_0 = arith.constant 0 : i32
    %c0_i32_1 = arith.constant 0 : i32
    return %c0_i32, %c0_i32_0 : i32, i32
  }
  func.func @transform_3(%arg0: i32) -> (i32, i32) {
    %c0_i32 = arith.constant 0 : i32
    %c0_i32_0 = arith.constant 0 : i32
    %c0_i32_1 = arith.constant 0 : i32
    return %c0_i32, %c0_i32_0 : i32, i32
  }
  func.func @transform_4(%arg0: i32) -> (i32, i32) {
    %c0_i32 = arith.constant 0 : i32
    %c0_i32_0 = arith.constant 0 : i32
    %c0_i32_1 = arith.constant 0 : i32
    return %c0_i32, %c0_i32_0 : i32, i32
  }
  func.func @transform_5(%arg0: i32) -> (i32, i32) {
    %c0_i32 = arith.constant 0 : i32
    %c0_i32_0 = arith.constant 0 : i32
    return %arg0, %c0_i32 : i32, i32
  }
}

</mosaic_0001>

<bundles_post_ra>
// kernel: net_forward.1
= control target key start
LH: loop header
LB: loop body
LE: loop exit
PB: predicated region body
PF: predicated region fallthrough
CT: control target
= control target key end

     0   :  { %s387_s1 = inlined_call_operand.vmem [shape: bf16[128,128], index: 1, kind: input, shape index: {}]   ;;  %s388_s3 = inlined_call_operand.vmem [shape: bf16[128,128], index: 3, kind: input, shape index: {}]   ;;  %s389_s2 = inlined_call_operand.vmem [shape: f32[1,128], index: 2, kind: input, shape index: {}]   ;;  %s390_s0 = inlined_call_operand.vmem [shape: bf16[16,128], index: 0, kind: input, shape index: {}]   ;;  %s391_s4 = inlined_call_operand.vmem [shape: f32[1,128], index: 4, kind: input, shape index: {}]   ;;  %s392_s5 = inlined_call_operand.vmem [shape: f32[16,128], index: 5, kind: output, shape index: {}]  }
   0x1   :  { %v279_v0 = vld [vmem:[%s387_s1 + $0x38] sm:$0xff]  ;;  %v278_v1 = vld [vmem:[%s387_s1 + $0x30] sm:$0xff]  ;;  %v277_v4 = vld [vmem:[%s387_s1 + $0x28] sm:$0xff] }
   0x2   :  { %96 = vmatpush.bf16.msra.mxu0 %v279_v0  ;;  %v287_v2 = vld [vmem:[%s388_s3 + $0x38] sm:$0xff]  ;;  %v286_v3 = vld [vmem:[%s388_s3 + $0x30] sm:$0xff]  ;;  %v285_v5 = vld [vmem:[%s388_s3 + $0x28] sm:$0xff] }
   0x3   :  { %181 = vmatpush.bf16.msra.mxu1 %v287_v2  ;;  %v276_v6 = vld [vmem:[%s387_s1 + $0x20] sm:$0xff]  ;;  %v275_v8 = vld [vmem:[%s387_s1 + $0x18] sm:$0xff]  ;;  %v274_v9 = vld [vmem:[%s387_s1 + $0x10] sm:$0xff] }
   0x4   :  { %v284_v7 = vld [vmem:[%s388_s3 + $0x20] sm:$0xff]  ;;  %v273_v10 = vld [vmem:[%s387_s1 + $0x8] sm:$0xff]  ;;  %v283_v13 = vld [vmem:[%s388_s3 + $0x18] sm:$0xff] }
   0x5   :  { %v272_v11 = vld [vmem:[%s387_s1] sm:$0xff]  ;;  %v282_v14 = vld [vmem:[%s388_s3 + $0x10] sm:$0xff]  ;;  %v281_v15 = vld [vmem:[%s388_s3 + $0x8] sm:$0xff] }
   0x6   :  { %97 = vmatpush.bf16.msra.mxu0 %v278_v1  ;;  %v271_v12 = vld [vmem:[%s390_s0] sm:$0xff] }
   0x7   :  { %182 = vmatpush.bf16.msra.mxu1 %v286_v3  ;;  %v280_v16 = vld [vmem:[%s388_s3] sm:$0xff] }
   0x8   :  { %v288_v18 = vld [vmem:[%s389_s2] ss:$0 sm:$0xff] }
   0x9   :  { %v289_v25 = vld [vmem:[%s391_s4] ss:$0 sm:$0xff] }
   0xa   :  { %98 = vmatpush.bf16.msra.mxu0 %v277_v4 }
   0xb   :  { %183 = vmatpush.bf16.msra.mxu1 %v285_v5 }
   0xe   :  { %99 = vmatpush.bf16.msra.mxu0 %v276_v6 }
   0xf   :  { %184 = vmatpush.bf16.msra.mxu1 %v284_v7 }
  0x12   :  { %100 = vmatpush.bf16.msra.mxu0 %v275_v8 }
  0x13   :  { %185 = vmatpush.bf16.msra.mxu1 %v283_v13 }
  0x16   :  { %101 = vmatpush.bf16.msra.mxu0 %v274_v9 }
  0x17   :  { %186 = vmatpush.bf16.msra.mxu1 %v282_v14 }
  0x1a   :  { %102 = vmatpush.bf16.msra.mxu0 %v273_v10 }
  0x1b   :  { %187 = vmatpush.bf16.msra.mxu1 %v281_v15 }
  0x1e   :  { %103 = vmatpush.bf16.msra.mxu0 %v272_v11 }
  0x1f   :  { %188 = vmatpush.bf16.msra.mxu1 %v280_v16 }
  0x21   :  { %104 = vmatmul.bf16.vlgmr.msra.gmra.mxu0 %v271_v12 }
  0x9e   :  { %v105_v17 = vpop.f32.mrf.mxu0 }
  0x9f   :  { %v106_v19 = vadd.f32 %v288_v18, %v105_v17 }
  0xa1   :  { %v110_v22 = vmax.f32 %v106_v19, 0.0 }
  0xa6   :  { %v107_v20 = vpop.f32.mrf.mxu0 }
  0xa7   :  { %v108_v21 = vadd.f32 %v288_v18, %v107_v20 }
  0xa9   :  { %v111_v23 = vmax.f32 %v108_v21, 0.0 }
  0xab   :  { %v112_v24 = vpack.c.bf16 %v111_v23, %v110_v22 }
  0xad   :  { %189 = vmatmul.bf16.vlgmr.msra.gmra.mxu1 %v112_v24 }
 0x12a   :  { %v190_v26 = vpop.f32.mrf.mxu1 }
 0x12b   :  { %v191_v27 = vadd.f32 %v289_v25, %v190_v26 }
 0x12d   :  { %290 = vtanh.f32 %v191_v27 }
 0x132   :  { %v192_v28 = vpop.f32.mrf.mxu1 }
 0x133   :  { %v291_v29 = vpop.eup %290  ;;  %v193_v30 = vadd.f32 %v289_v25, %v192_v28 }
 0x134   :  { %197 = vst [vmem:[%s392_s5] sm:$0xff] %v291_v29 }
 0x135   :  { %292 = vtanh.f32 %v193_v30 }
 0x13b   :  { %v293_v31 = vpop.eup %292 }
 0x13c   :  { %198 = vst [vmem:[%s392_s5 + $0x8] sm:$0xff] %v293_v31 }

</bundles_post_ra>
